<compile_context>
chip_gen: v5e
topology: v5e:2x2
jax: 0.10.0
libtpu: 0.0.40
codegen_flags: <defaults>
</compile_context>

<pallas_src>
import functools

import jax
import jax.numpy as jnp
from jax import lax
from jax.experimental import pallas as pl
from jax.experimental.pallas import tpu as pltpu


# ----------------------------------------------------------------------------
# helpers
# ----------------------------------------------------------------------------
def _round_up(x, m):
    return (x + m - 1) // m * m


def _pad2d(x, rows, cols):
    pr, pc = rows - x.shape[0], cols - x.shape[1]
    assert pr >= 0 and pc >= 0, (x.shape, rows, cols)
    if pr or pc:
        x = jnp.pad(x, ((0, pr), (0, pc)))
    return x


def _tpu_vmem_bytes():
    try:
        return int(pltpu.get_tpu_info().vmem_capacity_bytes)
    except Exception:
        return 64 * 1024 * 1024  # conservative (v7x-sized) fallback


def _tpu_config():
    """Generation-aware (working-set budget, scoped-vmem limit, tile defaults)."""
    phys = _tpu_vmem_bytes()
    budget = int(phys * 0.45)       # target live footprint (double-buffered)
    vmem_limit = int(phys * 0.75)   # scoped-VMEM limit handed to Mosaic
    if phys >= 96 * 1024 * 1024:    # v5e / v6e: 128 MiB physical VMEM
        tiles = dict(tm=512, tn=1024, tk=1024, tb=256, tgm=512)
    else:                           # v7x: 64 MiB physical VMEM
        tiles = dict(tm=512, tn=512, tk=512, tb=256, tgm=256)
    return budget, vmem_limit, tiles


def _matmul_plan(M, K, N, tiles):
    tm = min(tiles["tm"], _round_up(M, 8))
    tn = min(tiles["tn"], _round_up(N, 128))
    tk = min(tiles["tk"], _round_up(K, 128))
    return tm, tn, tk, _round_up(M, tm), _round_up(N, tn), _round_up(K, tk)


def _matmul_b_pad_target(K, N, tiles, transpose_b):
    """Padded shape pallas_matmul expects for operand b (depends only on b)."""
    tn = min(tiles["tn"], _round_up(N, 128))
    tk = min(tiles["tk"], _round_up(K, 128))
    Np, Kp = _round_up(N, tn), _round_up(K, tk)
    return (Np, Kp) if transpose_b else (Kp, Np)


# ----------------------------------------------------------------------------
# generic tiled matmul:  C = A @ B   (transpose_b=False, B is [K, N])
#                        C = A @ B^T (transpose_b=True,  B is [N, K])
# ----------------------------------------------------------------------------
def _dn(trans_b):
    return (((1,), (1,)), ((), ())) if trans_b else (((1,), (0,)), ((), ()))


def _mm_kernel_single(a_ref, b_ref, o_ref, *, trans_b):
    o_ref[...] = lax.dot_general(
        a_ref[...], b_ref[...], dimension_numbers=_dn(trans_b),
        preferred_element_type=jnp.float32).astype(o_ref.dtype)


def _mm_kernel_out_acc(a_ref, b_ref, o_ref, *, trans_b):
    # f32 output block is resident across the k axis -> accumulate in place.
    @pl.when(pl.program_id(2) == 0)
    def _():
        o_ref[...] = jnp.zeros_like(o_ref)

    o_ref[...] += lax.dot_general(
        a_ref[...], b_ref[...], dimension_numbers=_dn(trans_b),
        preferred_element_type=jnp.float32)


def _mm_kernel_scratch_acc(a_ref, b_ref, o_ref, acc_ref, *, trans_b):
    @pl.when(pl.program_id(2) == 0)
    def _():
        acc_ref[...] = jnp.zeros_like(acc_ref)

    acc_ref[...] += lax.dot_general(
        a_ref[...], b_ref[...], dimension_numbers=_dn(trans_b),
        preferred_element_type=jnp.float32)

    @pl.when(pl.program_id(2) == pl.num_programs(2) - 1)
    def _():
        o_ref[...] = acc_ref[...].astype(o_ref.dtype)


def pallas_matmul(a, b, *, transpose_b=False, b_logical_shape=None,
                  out_dtype=None, config=None):
    """C[M,N] = a[M,K] @ (b^T if transpose_b else b). b may be pre-padded."""
    budget, vmem_limit, tiles = config if config is not None else _tpu_config()
    M, K = a.shape
    if b_logical_shape is None:
        b_logical_shape = b.shape
    if transpose_b:
        N, Kb = b_logical_shape
    else:
        Kb, N = b_logical_shape
    assert K == Kb, (a.shape, b_logical_shape, transpose_b)
    out_dtype = jnp.dtype(out_dtype or a.dtype)

    tm, tn, tk, Mp, Np, Kp = _matmul_plan(M, K, N, tiles)
    a_p = _pad2d(a, Mp, Kp)
    b_target = (Np, Kp) if transpose_b else (Kp, Np)
    b_p = _pad2d(b, *b_target)            # no-op when b was pre-padded

    mt, nt, kt = Mp // tm, Np // tn, Kp // tk
    if transpose_b:
        b_spec = pl.BlockSpec((tn, tk), lambda i, j, k: (j, k))
    else:
        b_spec = pl.BlockSpec((tk, tn), lambda i, j, k: (k, j))

    if kt == 1:
        kernel = functools.partial(_mm_kernel_single, trans_b=transpose_b)
        scratch = []
    elif out_dtype == jnp.float32:
        kernel = functools.partial(_mm_kernel_out_acc, trans_b=transpose_b)
        scratch = []
    else:
        kernel = functools.partial(_mm_kernel_scratch_acc, trans_b=transpose_b)
        scratch = [pltpu.VMEM((tm, tn), jnp.float32)]

    a_b = jnp.dtype(a_p.dtype).itemsize
    b_b = jnp.dtype(b_p.dtype).itemsize
    o_b = out_dtype.itemsize
    out = pl.pallas_call(
        kernel,
        out_shape=jax.ShapeDtypeStruct((Mp, Np), out_dtype),
        grid_spec=pltpu.PrefetchScalarGridSpec(
            num_scalar_prefetch=0,
            grid=(mt, nt, kt),
            in_specs=[pl.BlockSpec((tm, tk), lambda i, j, k: (i, k)), b_spec],
            out_specs=pl.BlockSpec((tm, tn), lambda i, j, k: (i, j)),
            scratch_shapes=scratch,
        ),
        compiler_params=pltpu.CompilerParams(
            dimension_semantics=("parallel", "parallel", "arbitrary"),
            vmem_limit_bytes=vmem_limit),
        cost_estimate=pl.CostEstimate(
            flops=2 * Mp * Np * Kp,
            transcendentals=0,
            bytes_accessed=Mp * Kp * a_b + Kp * Np * b_b + Mp * Np * o_b),
    )(a_p, b_p)

    if (Mp, Np) != (M, N):
        out = out[:M, :N]
    return out


# ----------------------------------------------------------------------------
# fused gramian:  z = (x @ A^T) @ A, intermediate kept in VMEM (f32)
# ----------------------------------------------------------------------------
def _gramian_plan(B_hint, M, N, tiles, budget, in_itemsize=2):
    """Returns (mode, tb, tm, Mp, Np); mode in {'resident','tiled','unfused'}."""
    Np = _round_up(N, 128)
    tb0 = min(tiles["tb"], _round_up(B_hint, 8)) if B_hint else tiles["tb"]

    # Fast path: whole padded A resident in VMEM (grid only over batch tiles).
    Mp_full = _round_up(M, 8)
    resident = (2 * Mp_full * Np * in_itemsize   # A (counted x2, conservative)
                + 2 * tb0 * Np * in_itemsize     # x, double-buffered
                + 2 * tb0 * Np * 4               # out, f32
                + tb0 * Mp_full * 4)             # [tb, Mp] f32 intermediate
    if resident <= budget:
        return "resident", tb0, Mp_full, Mp_full, Np

    # Tiled path: shrink tm, then tb, before giving up on fusion.
    for tb_c in (tb0, max(8, tb0 // 2), max(8, tb0 // 4)):
        for tm_c in (tiles["tgm"], 256, 128, 64, 32, 16, 8):
            tm_c = min(tm_c, _round_up(M, 8))
            fp = (2 * tb_c * Np * in_itemsize + 2 * tm_c * Np * in_itemsize
                  + 2 * tb_c * Np * 4 + tb_c * tm_c * 4)
            if fp <= budget:
                return "tiled", tb_c, tm_c, _round_up(M, tm_c), Np
    return "unfused", tb0, tiles["tgm"], _round_up(M, tiles["tgm"]), Np


def _gramian_kernel_resident(x_ref, a_ref, o_ref):
    y = lax.dot_general(x_ref[...], a_ref[...],
                        dimension_numbers=(((1,), (1,)), ((), ())),
                        preferred_element_type=jnp.float32)
    o_ref[...] = jnp.dot(y.astype(a_ref.dtype), a_ref[...],
                         preferred_element_type=jnp.float32).astype(o_ref.dtype)


def _gramian_kernel_tiled(x_ref, a_ref, o_ref):
    # f32 output block is resident across the m axis -> accumulate in place.
    @pl.when(pl.program_id(1) == 0)
    def _():
        o_ref[...] = jnp.zeros_like(o_ref)

    y = lax.dot_general(x_ref[...], a_ref[...],
                        dimension_numbers=(((1,), (1,)), ((), ())),
                        preferred_element_type=jnp.float32)
    o_ref[...] += jnp.dot(y.astype(a_ref.dtype), a_ref[...],
                          preferred_element_type=jnp.float32)


def _gramian_kernel_tiled_scratch(x_ref, a_ref, o_ref, acc_ref):
    @pl.when(pl.program_id(1) == 0)
    def _():
        acc_ref[...] = jnp.zeros_like(acc_ref)

    y = lax.dot_general(x_ref[...], a_ref[...],
                        dimension_numbers=(((1,), (1,)), ((), ())),
                        preferred_element_type=jnp.float32)
    acc_ref[...] += jnp.dot(y.astype(a_ref.dtype), a_ref[...],
                            preferred_element_type=jnp.float32)

    @pl.when(pl.program_id(1) == pl.num_programs(1) - 1)
    def _():
        o_ref[...] = acc_ref[...].astype(o_ref.dtype)


def pallas_gramian(x, A, *, a_logical_shape=None, plan=None, out_dtype=None,
                   config=None):
    """z[B,N] = (x[B,N] @ A[M,N]^T) @ A[M,N], fused in one pallas_call."""
    budget, vmem_limit, tiles = config if config is not None else _tpu_config()
    B, N = x.shape
    if a_logical_shape is None:
        a_logical_shape = A.shape
    M, NA = a_logical_shape
    assert N == NA, (x.shape, a_logical_shape)
    out_dtype = jnp.dtype(out_dtype or x.dtype)

    if plan is None:
        plan = _gramian_plan(B, M, N, tiles, budget,
                             in_itemsize=jnp.dtype(x.dtype).itemsize)
    mode, tb, tm, Mp, Np = plan
    tb = min(tb, _round_up(B, 8))

    if mode == "unfused":
        A_l = A[:M, :N]
        y = pallas_matmul(x, A_l, transpose_b=True, out_dtype=out_dtype,
                          config=config)
        return pallas_matmul(y.astype(A.dtype), A_l, out_dtype=out_dtype,
                             config=config)

    Bp = _round_up(B, tb)
    x_p = _pad2d(x, Bp, Np)
    A_p = _pad2d(A, Mp, Np)                # no-op when A was pre-padded

    x_b = jnp.dtype(x_p.dtype).itemsize
    a_b = jnp.dtype(A_p.dtype).itemsize
    cost = pl.CostEstimate(
        flops=4 * Bp * Mp * Np, transcendentals=0,
        bytes_accessed=Bp * Np * x_b + Mp * Np * a_b + Bp * Np * out_dtype.itemsize)

    if mode == "resident":
        out = pl.pallas_call(
            _gramian_kernel_resident,
            out_shape=jax.ShapeDtypeStruct((Bp, Np), out_dtype),
            grid_spec=pltpu.PrefetchScalarGridSpec(
                num_scalar_prefetch=0,
                grid=(Bp // tb,),
                in_specs=[pl.BlockSpec((tb, Np), lambda i: (i, 0)),
                          pl.BlockSpec((Mp, Np), lambda i: (0, 0))],
                out_specs=pl.BlockSpec((tb, Np), lambda i: (i, 0)),
            ),
            compiler_params=pltpu.CompilerParams(
                dimension_semantics=("parallel",),
                vmem_limit_bytes=vmem_limit),
            cost_estimate=cost,
        )(x_p, A_p)
    else:  # "tiled": reduction over M-tiles (last grid axis)
        if out_dtype == jnp.float32:
            kernel, scratch = _gramian_kernel_tiled, []
        else:
            kernel = _gramian_kernel_tiled_scratch
            scratch = [pltpu.VMEM((tb, Np), jnp.float32)]
        out = pl.pallas_call(
            kernel,
            out_shape=jax.ShapeDtypeStruct((Bp, Np), out_dtype),
            grid_spec=pltpu.PrefetchScalarGridSpec(
                num_scalar_prefetch=0,
                grid=(Bp // tb, Mp // tm),
                in_specs=[pl.BlockSpec((tb, Np), lambda i, m: (i, 0)),
                          pl.BlockSpec((tm, Np), lambda i, m: (m, 0))],
                out_specs=pl.BlockSpec((tb, Np), lambda i, m: (i, 0)),
                scratch_shapes=scratch,
            ),
            compiler_params=pltpu.CompilerParams(
                dimension_semantics=("parallel", "arbitrary"),
                vmem_limit_bytes=vmem_limit),
            cost_estimate=cost,
        )(x_p, A_p)

    if (Bp, Np) != (B, N):
        out = out[:B, :N]
    return out


# ----------------------------------------------------------------------------
# concrete dense instantiation of the abstract LinearOperator base class
# ----------------------------------------------------------------------------
class LinearOperator:
    """forward: y = x @ A^T, adjoint: z = y @ A, gramian: z = A^T A x (fused)."""

    def __init__(self, A, compute_dtype=jnp.bfloat16):
        self.M, self.N = A.shape
        self.compute_dtype = compute_dtype
        self.out_dtype = jnp.float32
        self.config = _tpu_config()
        budget, _, tiles = self.config

        A_c = jnp.asarray(A, dtype=compute_dtype)   # single bf16 cast, once

        # Pre-pad A once per required padded shape (deduped) so no per-call
        # padded copy of A is ever re-materialized in HBM.
        cache = {}

        def padded(rows, cols):
            key = (rows, cols)
            if key not in cache:
                cache[key] = _pad2d(A_c, rows, cols)
            return cache[key]

        self._A_fwd = padded(*_matmul_b_pad_target(
            K=self.N, N=self.M, tiles=tiles, transpose_b=True))
        self._A_adj = padded(*_matmul_b_pad_target(
            K=self.M, N=self.N, tiles=tiles, transpose_b=False))

        self._gram_plan = _gramian_plan(
            None, self.M, self.N, tiles, budget,
            in_itemsize=jnp.dtype(compute_dtype).itemsize)
        mode, _, _, Mp, Np = self._gram_plan
        self._A_gram = None if mode == "unfused" else padded(Mp, Np)

    def forward(self, x):    # [B, N] -> [B, M]
        xb = x.astype(self.compute_dtype)
        return pallas_matmul(xb, self._A_fwd, transpose_b=True,
                             b_logical_shape=(self.M, self.N),
                             out_dtype=self.out_dtype, config=self.config)

    def adjoint(self, y):    # [B, M] -> [B, N]
        yb = y.astype(self.compute_dtype)
        return pallas_matmul(yb, self._A_adj, transpose_b=False,
                             b_logical_shape=(self.M, self.N),
                             out_dtype=self.out_dtype, config=self.config)

    def gramian(self, x):    # [B, N] -> [B, N]
        if self._gram_plan[0] == "unfused":
            # Uses the cached padded A for both matmuls.
            return self.adjoint(self.forward(x))
        xb = x.astype(self.compute_dtype)
        return pallas_gramian(xb, self._A_gram,
                              a_logical_shape=(self.M, self.N),
                              plan=self._gram_plan,
                              out_dtype=self.out_dtype, config=self.config)


if __name__ == "__main__":
    key = jax.random.PRNGKey(0)
    kx, kA = jax.random.split(key)

    B, N, M = 8, 256, 128   # (batch, signal dim, measurement dim)
    x = jax.random.normal(kx, (B, N), dtype=jnp.float32)
    A = jax.random.normal(kA, (M, N), dtype=jnp.float32) / jnp.sqrt(N)

    op = LinearOperator(A)

    y = op.forward(x)        # [B, M]
    z_adj = op.adjoint(y)    # [B, N]  (unfused path: adjoint(forward(x)))
    z = op.gramian(x)        # [B, N]  (fused path)
    jax.block_until_ready((y, z_adj, z))

    # References computed with the same bf16-cast operands (MXU runs bf16 with
    # f32 accumulation), plus a loose sanity check against pure-f32 math.
    xb = x.astype(jnp.bfloat16).astype(jnp.float32)
    Ab = A.astype(jnp.bfloat16).astype(jnp.float32)
    y_ref = xb @ Ab.T
    z_adj_ref = y.astype(jnp.bfloat16).astype(jnp.float32) @ Ab
    z_ref = y_ref.astype(jnp.bfloat16).astype(jnp.float32) @ Ab

    assert jnp.allclose(y, y_ref, atol=1e-2, rtol=1e-2)
    assert jnp.allclose(z_adj, z_adj_ref, atol=1e-2, rtol=1e-2)
    assert jnp.allclose(z, z_ref, atol=1e-2, rtol=1e-2)
    assert jnp.allclose(y, x @ A.T, atol=7e-2, rtol=7e-2)
    assert jnp.allclose(z, (x @ A.T) @ A, atol=1e-1, rtol=1e-1)

    print("KERNEL_OK")
</pallas_src>

<mosaic_0001>
module attributes {stable_mosaic.version = 11 : i64} {
  func.func @_mm_kernel_single(%arg0: i32, %arg1: i32, %arg2: i32, %arg3: memref<8x256xbf16, #tpu.memory_space<vmem>>, %arg4: memref<128x256xbf16, #tpu.memory_space<vmem>>, %arg5: memref<8x128xf32, #tpu.memory_space<vmem>>) attributes {dimension_semantics = [#tpu.dimension_semantics<parallel>, #tpu.dimension_semantics<parallel>, #tpu.dimension_semantics<arbitrary>], iteration_bounds = array<i64: 1, 1, 1>, scalar_prefetch = 0 : i64, scratch_operands = 0 : i64, tpu.core_type = #tpu.core_type<tc>, window_params = [{transform_indices = @transform_0, window_bounds = array<i64: 8, 256>}, {transform_indices = @transform_1, window_bounds = array<i64: 128, 256>}, {transform_indices = @transform_2, window_bounds = array<i64: 8, 128>}]} {
    %c0 = arith.constant 0 : index
    %c0_0 = arith.constant 0 : index
    %0 = vector.load %arg3[%c0, %c0_0] : memref<8x256xbf16, #tpu.memory_space<vmem>>, vector<8x256xbf16>
    %c0_1 = arith.constant 0 : index
    %c0_2 = arith.constant 0 : index
    %1 = vector.load %arg4[%c0_1, %c0_2] : memref<128x256xbf16, #tpu.memory_space<vmem>>, vector<128x256xbf16>
    %cst = arith.constant dense<0.000000e+00> : vector<8x128xf32>
    %2 = tpu.matmul %0, %1, %cst {dimension_numbers = #tpu.dot_dimension_numbers<[1], [1], [0], [0], [0, 0, 1, 0], [], []>} : vector<8x256xbf16>, vector<128x256xbf16>, vector<8x128xf32> -> vector<8x128xf32>
    %c0_3 = arith.constant 0 : index
    %c0_4 = arith.constant 0 : index
    %3 = vector.load %arg5[%c0_3, %c0_4] : memref<8x128xf32, #tpu.memory_space<vmem>>, vector<8x128xf32>
    tpu.vector_store %arg5[%c0_3, %c0_4], %2 {strides = array<i32>} : memref<8x128xf32, #tpu.memory_space<vmem>>, vector<8x128xf32>,
    return
  }
  func.func @transform_0(%arg0: i32, %arg1: i32, %arg2: i32) -> (i32, i32) {
    %c0_i32 = arith.constant 0 : i32
    return %arg0, %arg2 : i32, i32
  }
  func.func @transform_1(%arg0: i32, %arg1: i32, %arg2: i32) -> (i32, i32) {
    %c0_i32 = arith.constant 0 : i32
    return %arg1, %arg2 : i32, i32
  }
  func.func @transform_2(%arg0: i32, %arg1: i32, %arg2: i32) -> (i32, i32) {
    %c0_i32 = arith.constant 0 : i32
    return %arg0, %arg1 : i32, i32
  }
}

</mosaic_0001>

<bundles_post_ra>
// kernel: tpu_custom_call.1
= control target key start
LH: loop header
LB: loop body
LE: loop exit
PB: predicated region body
PF: predicated region fallthrough
CT: control target
= control target key end

     0   :  { %7 = vsyncpa [#allocation3], 0  ;;  %s383_s0 = inlined_call_operand.hbm [shape: bf16[8,256], index: 0, kind: input, shape index: {}]   ;;  %s384_s1 = inlined_call_operand.hbm [shape: bf16[128,256], index: 1, kind: input, shape index: {}]   ;;  %s385_s2 = inlined_call_operand.hbm [shape: f32[8,128], index: 2, kind: output, shape index: {}]  }
   0x1   :  { %8 = vsyncpa [#allocation6], 0 }
   0x2   :  { %9 = vsyncpa [#allocation4], 0  ;;  %s15_s11 = sshll.u32 %s383_s0, 4  ;;  %s354_s12 = smov [#allocation2]   ;;  %s16_s11 = int_to_ptr.hbm [resolvable:$true] %s15_s11 }
   0x3   :  { %s17_s13 = sshll.u32 %s354_s12, 4  ;;  %s25_s16 = sshll.u32 %s384_s1, 4  ;;  %s18_s13 = int_to_ptr.vmem [resolvable:$true] %s17_s13  ;;  %s26_s16 = int_to_ptr.hbm [resolvable:$true] %s25_s16 }
   0x4   :  { %20 = dma.hbm_to_vmem [thread:$0]  %s16_s11, 128, %s18_s13, [#allocation3]  }
   0x5   :  { %s355_s17 = smov [#allocation5]   ;;  %s356_s19 = smov 128  }
   0x6   :  { %s27_s18 = sshll.u32 %s355_s17, 4  ;;  %s357_s20 = smov 8   ;;  %s28_s18 = int_to_ptr.vmem [resolvable:$true] %s27_s18 }
   0x7   :  { %33 = dma.hbm_to_vmem [thread:$0]  %s26_s16, 2048, %s28_s18, [#allocation6], %s356_s19, %s356_s19, %s357_s20  }
   0x8   :  { %348 = dma.done.wait [#allocation3], 128  }
   0x9   :  { %349 = vsyncadd [#allocation3], 4294967168 }
   0xa   :  { %350 = dma.done.wait [#allocation6], 2048  }
   0xb   :  { %351 = vsyncadd [#allocation6], 4294965248  ;;  %v249_v0 = vld [vmem:[#allocation5 + $0x70] sm:$0xf]  ;;  %v270_v1 = vld [vmem:[#allocation5 + $0x74] sm:$0xf0] }
   0xc   :  { %v269_v2 = vld [vmem:[#allocation5 + $0x74] sm:$0xf]  ;;  %v250_v3 = vor.u32 %v270_v1, %v249_v0  ;;  %v251_v4 = vld [vmem:[#allocation5 + $0x78] sm:$0xf0]  ;;  %v241_v6 = vld [vmem:[#allocation5 + $0x60] sm:$0xf] }
   0xd   :  { %v254_v5 = vor.u32 %v269_v2, %v251_v4  ;;  %v268_v7 = vld [vmem:[#allocation5 + $0x64] sm:$0xf0]  ;;  %v267_v8 = vld [vmem:[#allocation5 + $0x64] sm:$0xf]  ;;  %v243_v9 = vld [vmem:[#allocation5 + $0x68] sm:$0xf0] }
   0xe   :  { %146 = vmatpush.bf16.xpose.msra.mxu0 %v250_v3  ;;  %v242_v10 = vor.u32 %v268_v7, %v241_v6  ;;  %v246_v11 = vor.u32 %v267_v8, %v243_v9  ;;  %v233_v12 = vld [vmem:[#allocation5 + $0x50] sm:$0xf]  ;;  %v266_v13 = vld [vmem:[#allocation5 + $0x54] sm:$0xf0]  ;;  %v265_v14 = vld [vmem:[#allocation5 + $0x54] sm:$0xf] }
   0xf   :  { %159 = vmatpush.bf16.xpose.msra.mxu1 %v254_v5  ;;  %v235_v15 = vld [vmem:[#allocation5 + $0x58] sm:$0xf0]  ;;  %v234_v16 = vor.u32 %v266_v13, %v233_v12  ;;  %v225_v18 = vld [vmem:[#allocation5 + $0x40] sm:$0xf]  ;;  %v264_v19 = vld [vmem:[#allocation5 + $0x44] sm:$0xf0] }
  0x10   :  { %v238_v17 = vor.u32 %v265_v14, %v235_v15  ;;  %v263_v20 = vld [vmem:[#allocation5 + $0x44] sm:$0xf]  ;;  %v227_v21 = vld [vmem:[#allocation5 + $0x48] sm:$0xf0]  ;;  %v226_v22 = vor.u32 %v264_v19, %v225_v18  ;;  %v217_v24 = vld [vmem:[#allocation5 + $0x30] sm:$0xf] }
  0x11   :  { %v230_v23 = vor.u32 %v263_v20, %v227_v21  ;;  %v262_v25 = vld [vmem:[#allocation5 + $0x34] sm:$0xf0]  ;;  %v261_v26 = vld [vmem:[#allocation5 + $0x34] sm:$0xf]  ;;  %v219_v27 = vld [vmem:[#allocation5 + $0x38] sm:$0xf0] }
  0x12   :  { %v218_v28 = vor.u32 %v262_v25, %v217_v24  ;;  %v222_v29 = vor.u32 %v261_v26, %v219_v27  ;;  %v209_v30 = vld [vmem:[#allocation5 + $0x20] sm:$0xf]  ;;  %v260_v31 = vld [vmem:[#allocation5 + $0x24] sm:$0xf0]  ;;  %v259_v32 = vld [vmem:[#allocation5 + $0x24] sm:$0xf] }
  0x13   :  { %v211_v33 = vld [vmem:[#allocation5 + $0x28] sm:$0xf0]  ;;  %v210_v34 = vor.u32 %v260_v31, %v209_v30  ;;  %v201_v36 = vld [vmem:[#allocation5 + $0x10] sm:$0xf]  ;;  %v258_v37 = vld [vmem:[#allocation5 + $0x14] sm:$0xf0] }
  0x14   :  { %v214_v35 = vor.u32 %v259_v32, %v211_v33  ;;  %v257_v38 = vld [vmem:[#allocation5 + $0x14] sm:$0xf]  ;;  %v203_v39 = vld [vmem:[#allocation5 + $0x18] sm:$0xf0]  ;;  %v202_v40 = vor.u32 %v258_v37, %v201_v36  ;;  %v193_v42 = vld [vmem:[#allocation5] sm:$0xf] }
  0x15   :  { %v206_v41 = vor.u32 %v257_v38, %v203_v39  ;;  %v256_v43 = vld [vmem:[#allocation5 + $0x4] sm:$0xf0]  ;;  %v255_v44 = vld [vmem:[#allocation5 + $0x4] sm:$0xf]  ;;  %v195_v45 = vld [vmem:[#allocation5 + $0x8] sm:$0xf0] }
  0x16   :  { %147 = vmatpush.bf16.xpose.msra.mxu0 %v242_v10  ;;  %v194_v46 = vor.u32 %v256_v43, %v193_v42  ;;  %v42_v47 = vld [vmem:[#allocation2] sm:$0xff]  ;;  %v198_v48 = vor.u32 %v255_v44, %v195_v45  ;;  %s358_s0 = smov [#allocation7]   ;;  %s180_s23 = sshll.u32 %s385_s2, 4  ;;  %s181_s23 = int_to_ptr.hbm [resolvable:$true] %s180_s23 }
  0x17   :  { %160 = vmatpush.bf16.xpose.msra.mxu1 %v246_v11  ;;  %v60_v49 = vunpack.c.l.b16 %v42_v47  ;;  %v61_v50 = vunpack.c.h.b16 %v42_v47  ;;  %s178_s1 = sshll.u32 %s358_s0, 4  ;;  %s179_s1 = int_to_ptr.vmem [resolvable:$true] %s178_s1 }
  0x19   :  { %v62_v51 = vpack.c.b16 %v60_v49, %v60_v49  ;;  %v63_v52 = vpack.c.b16 %v61_v50, %v61_v50 }
  0x1e   :  { %148 = vmatpush.bf16.xpose.msra.mxu0 %v234_v16 }
  0x1f   :  { %161 = vmatpush.bf16.xpose.msra.mxu1 %v238_v17 }
  0x26   :  { %149 = vmatpush.bf16.xpose.msra.mxu0 %v226_v22 }
  0x27   :  { %162 = vmatpush.bf16.xpose.msra.mxu1 %v230_v23 }
  0x2e   :  { %150 = vmatpush.bf16.xpose.msra.mxu0 %v218_v28 }
  0x2f   :  { %163 = vmatpush.bf16.xpose.msra.mxu1 %v222_v29 }
  0x36   :  { %151 = vmatpush.bf16.xpose.msra.mxu0 %v210_v34 }
  0x37   :  { %164 = vmatpush.bf16.xpose.msra.mxu1 %v214_v35 }
  0x3e   :  { %152 = vmatpush.bf16.xpose.msra.mxu0 %v202_v40 }
  0x3f   :  { %165 = vmatpush.bf16.xpose.msra.mxu1 %v206_v41 }
  0x46   :  { %153 = vmatpush.bf16.xpose.msra.mxu0 %v194_v46 }
  0x47   :  { %166 = vmatpush.bf16.xpose.msra.mxu1 %v198_v48 }
  0x4d   :  { %154 = vmatmul.bf16.vlgmr.msra.gmra.mxu0 %v62_v51 }
  0x4e   :  { %167 = vmatmul.bf16.vlgmr.msra.gmra.mxu1 %v63_v52 }
  0xca   :  { %v155_v53 = vpop.f32.mrf.mxu0 }
  0xcb   :  { %v168_v54 = vpop.f32.mrf.mxu1 }
  0xcc   :  { %v169_v55 = vadd.f32 %v168_v54, %v155_v53 }
  0xce   :  { %172 = vst [vmem:[#allocation7] sm:$0xff] %v169_v55 }
  0xcf   :  { %183 = dma.vmem_to_hbm [thread:$0]  %s179_s1, 128, %s181_s23, [#allocation4]  }
  0xd2   :  { %v157_v56 = vpop.f32.mrf.mxu0 }
  0xd3   :  { %v170_v57 = vpop.f32.mrf.mxu1 }
  0xd4   :  { %352 = dma.done.wait [#allocation4], 128  }
  0xd5   :  { %353 = vsyncadd [#allocation4], 4294967168 }
  0xd6   :  { %188 = vsyncpa [#allocation3], 1 }
  0xd7   :  { %189 = vsyncpa [#allocation6], 1 }
  0xd8   :  { %190 = vsyncpa [#allocation4], 1 }

</bundles_post_ra>
